<compile_context>
chip_gen: v7x
topology: tpu7x:2x2x1
jax: 0.10.0
libtpu: 0.0.40
codegen_flags: <defaults>
</compile_context>

<pallas_src>
import math

import jax
import jax.numpy as jnp
from jax import lax
from jax.experimental import pallas as pl
from jax.experimental.pallas import tpu as pltpu


# ----------------------------------------------------------------------------
# helpers
# ----------------------------------------------------------------------------
def _layernorm(x, gamma, beta, eps=1e-12):
    # Matches torch module: mean / biased var over last dim, eps = 1e-12.
    mean = jnp.mean(x, axis=-1, keepdims=True)
    var = jnp.mean((x - mean) ** 2, axis=-1, keepdims=True)
    inv = lax.rsqrt(var + eps)              # rsqrt -> EUP slot (free vs. VPU divide)
    return gamma * ((x - mean) * inv) + beta


# ----------------------------------------------------------------------------
# Pallas kernel: one grid step == one EncoderLayer applied to one batch block.
# ----------------------------------------------------------------------------
def _make_encoder_kernel(n_head):
    def kernel(
        x_ref,
        wqkv_ref, bqkv_ref,
        wc_ref, bc_ref,
        g1_ref, be1_ref,
        w1_ref, b1_ref,
        w2_ref, b2_ref,
        g2_ref, be2_ref,
        o_ref,
    ):
        layer = pl.program_id(1)            # inner (arbitrary) axis = layers

        # Layer 0 of this batch block: seed the resident activation carry.
        @pl.when(layer == 0)
        def _():
            o_ref[...] = x_ref[...]

        BB, S, D = o_ref.shape              # (batch_block, seq_len, d_model)
        H = n_head
        dh = D // H
        rows = BB * S
        inv_sqrt = 1.0 / math.sqrt(dh)
        bf16 = jnp.bfloat16

        x = o_ref[...].reshape(rows, D)     # f32 carry, (rows, D)

        # --- fused QKV projection: one tall (rows, D) @ (D, 3D) MXU pass ------
        qkv = jnp.dot(x.astype(bf16), wqkv_ref[...],
                      preferred_element_type=jnp.float32) + bqkv_ref[...]

        # --- regroup heads: H static lane slices -> (H*BB, S, dh) bf16 --------
        def to_heads(t):
            t = t.astype(bf16)
            cols = [t[:, h * dh:(h + 1) * dh].reshape(BB, S, dh) for h in range(H)]
            return jnp.stack(cols, axis=0).reshape(H * BB, S, dh)

        qh = to_heads(qkv[:, 0:D])
        kh = to_heads(qkv[:, D:2 * D])
        vh = to_heads(qkv[:, 2 * D:3 * D])

        # --- batched scaled-dot-product attention (single batch-dim einsums) --
        score = jnp.einsum("gqd,gkd->gqk", qh, kh,
                           preferred_element_type=jnp.float32) * inv_sqrt
        # TODO(synk): apply src_mask (masked_fill(mask == 0, -10000)) here if given.
        score = score - jnp.max(score, axis=-1, keepdims=True)
        p = jnp.exp(score)
        p = p * pl.reciprocal(jnp.sum(p, axis=-1, keepdims=True), approx=True)
        ctx = jnp.einsum("gqk,gkd->gqd", p.astype(bf16), vh,
                         preferred_element_type=jnp.float32)     # (H*BB, S, dh)

        # --- concat heads back to (rows, D) ------------------------------------
        ctx4 = ctx.reshape(H, rows, dh)
        attn = jnp.concatenate([ctx4[h] for h in range(H)], axis=-1)

        attn = jnp.dot(attn.astype(bf16), wc_ref[...],
                       preferred_element_type=jnp.float32) + bc_ref[...]

        # residual + LayerNorm 1 (dropout == identity in eval mode)
        x1 = _layernorm(x + attn, g1_ref[...], be1_ref[...])

        # --- position-wise feed forward -----------------------------------------
        h1 = jnp.dot(x1.astype(bf16), w1_ref[...],
                     preferred_element_type=jnp.float32) + b1_ref[...]
        h1 = jnp.maximum(h1, 0.0)
        ff = jnp.dot(h1.astype(bf16), w2_ref[...],
                     preferred_element_type=jnp.float32) + b2_ref[...]

        # residual + LayerNorm 2 -> carry for next layer / final output
        out = _layernorm(x1 + ff, g2_ref[...], be2_ref[...])
        o_ref[...] = out.reshape(BB, S, D)

    return kernel


# ----------------------------------------------------------------------------
# wrapper
# ----------------------------------------------------------------------------
def _stack_layer_params(layer_params):
    """Stack per-layer params with a leading n_layers axis; fuse Q/K/V.

    Weight matrices are stored bf16 (MXU-native input, half the HBM->VMEM DMA
    bytes and half the VMEM residency); biases / LayerNorm params stay f32.
    """
    bf16 = jnp.bfloat16
    stacked = {
        "wqkv": jnp.stack([jnp.concatenate([p["wq"], p["wk"], p["wv"]], axis=1)
                           for p in layer_params]).astype(bf16),
        "bqkv": jnp.stack([jnp.concatenate([p["bq"], p["bk"], p["bv"]], axis=1)
                           for p in layer_params]),
    }
    for name in ("wc", "w1", "w2"):
        stacked[name] = jnp.stack([p[name] for p in layer_params]).astype(bf16)
    for name in ("bc", "gamma1", "beta1", "b1", "b2", "gamma2", "beta2"):
        stacked[name] = jnp.stack([p[name] for p in layer_params])
    return stacked


def _vmem_limit_bytes(bb, S, D, Hf, H):
    """Rough per-step VMEM working-set estimate (double-buffered streams)."""
    rows = bb * S
    weights = 2 * (D * 3 * D + D * D + D * Hf + Hf * D)            # bf16 slabs
    params = 4 * (3 * D + D + Hf + D + 4 * D)                       # f32 biases / LN
    acts = 4 * rows * D * 2                                         # x block + carry
    inter = 4 * (rows * (3 * D + Hf + 4 * D) + H * bb * S * S * 2)  # live temporaries
    need = 2 * (weights + params + acts) + inter
    need = int(need * 1.5) + (2 << 20)                              # headroom
    return int(min(max(need, 8 << 20), 64 << 20))                   # <= v7x physical


def encoder_pallas(x, layer_params, n_head, *, batch_block=1):
    """Full Encoder forward. x: (B, S, D) float32.

    batch_block: batch elements per grid block.  Keep >=2 blocks total so v7x's
    second TensorCore gets work; at real sizes pick batch_block so that
    batch_block * S >= 256 rows per matmul.
    """
    x = x.astype(jnp.float32)
    B, S, D = x.shape
    assert D % n_head == 0, "d_model must be divisible by n_head"
    assert B % batch_block == 0, "batch must be divisible by batch_block"
    L = len(layer_params)
    Hf = layer_params[0]["w1"].shape[1]

    sp = _stack_layer_params(layer_params)

    def wspec(d0, d1):
        # one layer's (d0, d1) slab per grid step (leading layer dim squeezed)
        return pl.BlockSpec((None, d0, d1), lambda b, l: (l, 0, 0))

    act_in_spec = pl.BlockSpec((batch_block, S, D), lambda b, l: (b, 0, 0))
    act_out_spec = pl.BlockSpec((batch_block, S, D), lambda b, l: (b, 0, 0))

    in_specs = [
        act_in_spec,                                  # x (seed for the carry)
        wspec(D, 3 * D), wspec(1, 3 * D),             # fused wqkv, bqkv
        wspec(D, D), wspec(1, D),                     # w_concat, b_concat
        wspec(1, D), wspec(1, D),                     # gamma1, beta1
        wspec(D, Hf), wspec(1, Hf),                   # ffn w1, b1
        wspec(Hf, D), wspec(1, D),                    # ffn w2, b2
        wspec(1, D), wspec(1, D),                     # gamma2, beta2
    ]

    kernel = _make_encoder_kernel(n_head)
    out = pl.pallas_call(
        kernel,
        out_shape=jax.ShapeDtypeStruct((B, S, D), jnp.float32),
        grid=(B // batch_block, L),
        in_specs=in_specs,
        out_specs=act_out_spec,
        input_output_aliases={0: 0},                  # activation carry aliases x
        compiler_params=pltpu.CompilerParams(
            dimension_semantics=("parallel", "arbitrary"),
            vmem_limit_bytes=_vmem_limit_bytes(batch_block, S, D, Hf, n_head)),
    )(
        x,
        sp["wqkv"], sp["bqkv"],
        sp["wc"], sp["bc"],
        sp["gamma1"], sp["beta1"],
        sp["w1"], sp["b1"],
        sp["w2"], sp["b2"],
        sp["gamma2"], sp["beta2"],
    )
    return out


# ----------------------------------------------------------------------------
# Deterministic parameter init (nn.Linear shapes, weights stored pre-transposed
# as (in_features, out_features)).
# ----------------------------------------------------------------------------
def init_layer_params(key, d_model, ffn_hidden):
    ks = jax.random.split(key, 8)
    s_d = 1.0 / math.sqrt(d_model)
    s_h = 1.0 / math.sqrt(ffn_hidden)
    return {
        "wq": jax.random.normal(ks[0], (d_model, d_model), jnp.float32) * s_d,
        "bq": jax.random.normal(ks[1], (1, d_model), jnp.float32) * 0.01,
        "wk": jax.random.normal(ks[2], (d_model, d_model), jnp.float32) * s_d,
        "bk": jnp.zeros((1, d_model), jnp.float32),
        "wv": jax.random.normal(ks[3], (d_model, d_model), jnp.float32) * s_d,
        "bv": jnp.zeros((1, d_model), jnp.float32),
        "wc": jax.random.normal(ks[4], (d_model, d_model), jnp.float32) * s_d,
        "bc": jax.random.normal(ks[5], (1, d_model), jnp.float32) * 0.01,
        "gamma1": jnp.ones((1, d_model), jnp.float32),
        "beta1": jnp.zeros((1, d_model), jnp.float32),
        "w1": jax.random.normal(ks[6], (d_model, ffn_hidden), jnp.float32) * s_d,
        "b1": jnp.zeros((1, ffn_hidden), jnp.float32),
        "w2": jax.random.normal(ks[7], (ffn_hidden, d_model), jnp.float32) * s_h,
        "b2": jnp.zeros((1, d_model), jnp.float32),
        "gamma2": jnp.ones((1, d_model), jnp.float32),
        "beta2": jnp.zeros((1, d_model), jnp.float32),
    }


# ----------------------------------------------------------------------------
# Pure-JAX f32 reference (mirrors the PyTorch forward, eval-mode dropout).
# ----------------------------------------------------------------------------
def encoder_ref(x, layer_params, n_head):
    def layernorm(x, g, b, eps=1e-12):
        m = x.mean(-1, keepdims=True)
        v = ((x - m) ** 2).mean(-1, keepdims=True)
        return g * (x - m) / jnp.sqrt(v + eps) + b

    for p in layer_params:
        B, S, D = x.shape
        dh = D // n_head
        q = x @ p["wq"] + p["bq"]
        k = x @ p["wk"] + p["bk"]
        v = x @ p["wv"] + p["bv"]
        split = lambda t: t.reshape(B, S, n_head, dh).transpose(0, 2, 1, 3)
        qh, kh, vh = split(q), split(k), split(v)
        score = jnp.einsum("bhqd,bhkd->bhqk", qh, kh) / math.sqrt(dh)
        score = jax.nn.softmax(score, axis=-1)
        out = jnp.einsum("bhqk,bhkd->bhqd", score, vh)
        out = out.transpose(0, 2, 1, 3).reshape(B, S, D)
        out = out @ p["wc"] + p["bc"]
        x1 = layernorm(x + out, p["gamma1"], p["beta1"])
        h = jnp.maximum(x1 @ p["w1"] + p["b1"], 0.0)
        ff = h @ p["w2"] + p["b2"]
        x = layernorm(x1 + ff, p["gamma2"], p["beta2"])
    return x


# ----------------------------------------------------------------------------
if __name__ == "__main__":
    batch, seq_len, d_model = 2, 8, 32
    n_head, ffn_hidden, n_layers = 4, 64, 2

    key = jax.random.PRNGKey(0)
    kx, kp = jax.random.split(key)
    x = jax.random.normal(kx, (batch, seq_len, d_model), jnp.float32)

    layer_keys = jax.random.split(kp, n_layers)
    layer_params = [init_layer_params(layer_keys[i], d_model, ffn_hidden)
                    for i in range(n_layers)]

    # f32 reference computed first (kernel uses bf16 matmul inputs).
    ref = encoder_ref(x, layer_params, n_head)

    out = encoder_pallas(x, layer_params, n_head, batch_block=1)
    out = jax.block_until_ready(out)

    assert out.shape == (batch, seq_len, d_model)
    # bf16 matmul inputs with f32 accumulation -> looser tolerance vs f32 reference.
    assert jnp.allclose(out, ref, atol=5e-2, rtol=5e-2), "mismatch vs reference"

    print("KERNEL_OK")
</pallas_src>

<mosaic_0001>
module attributes {stable_mosaic.version = 11 : i64} {
  func.func @kernel(%arg0: i32, %arg1: i32, %arg2: memref<1x8x32xf32, #tpu.memory_space<vmem>>, %arg3: memref<1x32x96xbf16, #tpu.memory_space<vmem>>, %arg4: memref<1x1x96xf32, #tpu.memory_space<vmem>>, %arg5: memref<1x32x32xbf16, #tpu.memory_space<vmem>>, %arg6: memref<1x1x32xf32, #tpu.memory_space<vmem>>, %arg7: memref<1x1x32xf32, #tpu.memory_space<vmem>>, %arg8: memref<1x1x32xf32, #tpu.memory_space<vmem>>, %arg9: memref<1x32x64xbf16, #tpu.memory_space<vmem>>, %arg10: memref<1x1x64xf32, #tpu.memory_space<vmem>>, %arg11: memref<1x64x32xbf16, #tpu.memory_space<vmem>>, %arg12: memref<1x1x32xf32, #tpu.memory_space<vmem>>, %arg13: memref<1x1x32xf32, #tpu.memory_space<vmem>>, %arg14: memref<1x1x32xf32, #tpu.memory_space<vmem>>, %arg15: memref<1x8x32xf32, #tpu.memory_space<vmem>>) attributes {dimension_semantics = [#tpu.dimension_semantics<parallel>, #tpu.dimension_semantics<arbitrary>], iteration_bounds = array<i64: 2, 2>, scalar_prefetch = 0 : i64, scratch_operands = 0 : i64, tpu.core_type = #tpu.core_type<tc>, window_params = [{transform_indices = @transform_0, window_bounds = array<i64: 1, 8, 32>}, {transform_indices = @transform_1, window_bounds = array<i64: 1, 32, 96>}, {transform_indices = @transform_2, window_bounds = array<i64: 1, 1, 96>}, {transform_indices = @transform_3, window_bounds = array<i64: 1, 32, 32>}, {transform_indices = @transform_4, window_bounds = array<i64: 1, 1, 32>}, {transform_indices = @transform_5, window_bounds = array<i64: 1, 1, 32>}, {transform_indices = @transform_6, window_bounds = array<i64: 1, 1, 32>}, {transform_indices = @transform_7, window_bounds = array<i64: 1, 32, 64>}, {transform_indices = @transform_8, window_bounds = array<i64: 1, 1, 64>}, {transform_indices = @transform_9, window_bounds = array<i64: 1, 64, 32>}, {transform_indices = @transform_10, window_bounds = array<i64: 1, 1, 32>}, {transform_indices = @transform_11, window_bounds = array<i64: 1, 1, 32>}, {transform_indices = @transform_12, window_bounds = array<i64: 1, 1, 32>}, {transform_indices = @transform_13, window_bounds = array<i64: 1, 8, 32>}]} {
    %c0_i32 = arith.constant 0 : i32
    %0 = arith.cmpi eq, %arg1, %c0_i32 : i32
    %1 = arith.extui %0 : i1 to i32
    %c0_i32_0 = arith.constant 0 : i32
    %2 = arith.cmpi ne, %1, %c0_i32_0 : i32
    scf.if %2 {
      %c0_61 = arith.constant 0 : index
      %c0_62 = arith.constant 0 : index
      %c0_63 = arith.constant 0 : index
      %167 = vector.load %arg2[%c0_61, %c0_62, %c0_63] : memref<1x8x32xf32, #tpu.memory_space<vmem>>, vector<1x8x32xf32>
      %c0_64 = arith.constant 0 : index
      %c0_65 = arith.constant 0 : index
      %c0_66 = arith.constant 0 : index
      %168 = vector.load %arg15[%c0_64, %c0_65, %c0_66] : memref<1x8x32xf32, #tpu.memory_space<vmem>>, vector<1x8x32xf32>
      tpu.vector_store %arg15[%c0_64, %c0_65, %c0_66], %167 {strides = array<i32>} : memref<1x8x32xf32, #tpu.memory_space<vmem>>, vector<1x8x32xf32>,
    } else {
    }
    %c0 = arith.constant 0 : index
    %c0_1 = arith.constant 0 : index
    %c0_2 = arith.constant 0 : index
    %3 = vector.load %arg15[%c0, %c0_1, %c0_2] : memref<1x8x32xf32, #tpu.memory_space<vmem>>, vector<1x8x32xf32>
    %4 = vector.shape_cast %3 : vector<1x8x32xf32> to vector<8x32xf32>
    %5 = arith.truncf %4 : vector<8x32xf32> to vector<8x32xbf16>
    %c0_3 = arith.constant 0 : index
    %c0_4 = arith.constant 0 : index
    %c0_5 = arith.constant 0 : index
    %6 = vector.load %arg3[%c0_3, %c0_4, %c0_5] : memref<1x32x96xbf16, #tpu.memory_space<vmem>>, vector<1x32x96xbf16>
    %7 = vector.shape_cast %6 : vector<1x32x96xbf16> to vector<32x96xbf16>
    %cst = arith.constant dense<0.000000e+00> : vector<8x96xf32>
    %8 = tpu.matmul %5, %7, %cst {dimension_numbers = #tpu.dot_dimension_numbers<[1], [0], [0], [1], [0, 0, 1, 1], [], []>} : vector<8x32xbf16>, vector<32x96xbf16>, vector<8x96xf32> -> vector<8x96xf32>
    %c0_6 = arith.constant 0 : index
    %c0_7 = arith.constant 0 : index
    %c0_8 = arith.constant 0 : index
    %9 = vector.load %arg4[%c0_6, %c0_7, %c0_8] : memref<1x1x96xf32, #tpu.memory_space<vmem>>, vector<1x1x96xf32>
    %10 = vector.shape_cast %9 : vector<1x1x96xf32> to vector<1x96xf32>
    %11 = vector.broadcast %10 : vector<1x96xf32> to vector<8x96xf32>
    %12 = arith.addf %8, %11 : vector<8x96xf32>
    %13 = vector.extract_strided_slice %12 {offsets = [0, 0], sizes = [8, 32], strides = [1, 1]} : vector<8x96xf32> to vector<8x32xf32>
    %14 = arith.truncf %13 : vector<8x32xf32> to vector<8x32xbf16>
    %15 = vector.extract_strided_slice %14 {offsets = [0, 0], sizes = [8, 8], strides = [1, 1]} : vector<8x32xbf16> to vector<8x8xbf16>
    %16 = vector.shape_cast %15 : vector<8x8xbf16> to vector<1x8x8xbf16>
    %17 = vector.extract_strided_slice %14 {offsets = [0, 8], sizes = [8, 8], strides = [1, 1]} : vector<8x32xbf16> to vector<8x8xbf16>
    %18 = vector.shape_cast %17 : vector<8x8xbf16> to vector<1x8x8xbf16>
    %19 = vector.extract_strided_slice %14 {offsets = [0, 16], sizes = [8, 8], strides = [1, 1]} : vector<8x32xbf16> to vector<8x8xbf16>
    %20 = vector.shape_cast %19 : vector<8x8xbf16> to vector<1x8x8xbf16>
    %21 = vector.extract_strided_slice %14 {offsets = [0, 24], sizes = [8, 8], strides = [1, 1]} : vector<8x32xbf16> to vector<8x8xbf16>
    %22 = vector.shape_cast %21 : vector<8x8xbf16> to vector<1x8x8xbf16>
    %23 = vector.shape_cast %16 : vector<1x8x8xbf16> to vector<1x1x8x8xbf16>
    %24 = vector.shape_cast %18 : vector<1x8x8xbf16> to vector<1x1x8x8xbf16>
    %25 = vector.shape_cast %20 : vector<1x8x8xbf16> to vector<1x1x8x8xbf16>
    %26 = vector.shape_cast %22 : vector<1x8x8xbf16> to vector<1x1x8x8xbf16>
    %27 = tpu.concatenate %23, %24, %25, %26 in 0 : vector<1x1x8x8xbf16>, vector<1x1x8x8xbf16>, vector<1x1x8x8xbf16>, vector<1x1x8x8xbf16> -> vector<4x1x8x8xbf16>
    %28 = vector.shape_cast %27 : vector<4x1x8x8xbf16> to vector<4x8x8xbf16>
    %29 = vector.extract_strided_slice %12 {offsets = [0, 32], sizes = [8, 32], strides = [1, 1]} : vector<8x96xf32> to vector<8x32xf32>
    %30 = arith.truncf %29 : vector<8x32xf32> to vector<8x32xbf16>
    %31 = vector.extract_strided_slice %30 {offsets = [0, 0], sizes = [8, 8], strides = [1, 1]} : vector<8x32xbf16> to vector<8x8xbf16>
    %32 = vector.shape_cast %31 : vector<8x8xbf16> to vector<1x8x8xbf16>
    %33 = vector.extract_strided_slice %30 {offsets = [0, 8], sizes = [8, 8], strides = [1, 1]} : vector<8x32xbf16> to vector<8x8xbf16>
    %34 = vector.shape_cast %33 : vector<8x8xbf16> to vector<1x8x8xbf16>
    %35 = vector.extract_strided_slice %30 {offsets = [0, 16], sizes = [8, 8], strides = [1, 1]} : vector<8x32xbf16> to vector<8x8xbf16>
    %36 = vector.shape_cast %35 : vector<8x8xbf16> to vector<1x8x8xbf16>
    %37 = vector.extract_strided_slice %30 {offsets = [0, 24], sizes = [8, 8], strides = [1, 1]} : vector<8x32xbf16> to vector<8x8xbf16>
    %38 = vector.shape_cast %37 : vector<8x8xbf16> to vector<1x8x8xbf16>
    %39 = vector.shape_cast %32 : vector<1x8x8xbf16> to vector<1x1x8x8xbf16>
    %40 = vector.shape_cast %34 : vector<1x8x8xbf16> to vector<1x1x8x8xbf16>
    %41 = vector.shape_cast %36 : vector<1x8x8xbf16> to vector<1x1x8x8xbf16>
    %42 = vector.shape_cast %38 : vector<1x8x8xbf16> to vector<1x1x8x8xbf16>
    %43 = tpu.concatenate %39, %40, %41, %42 in 0 : vector<1x1x8x8xbf16>, vector<1x1x8x8xbf16>, vector<1x1x8x8xbf16>, vector<1x1x8x8xbf16> -> vector<4x1x8x8xbf16>
    %44 = vector.shape_cast %43 : vector<4x1x8x8xbf16> to vector<4x8x8xbf16>
    %45 = vector.extract_strided_slice %12 {offsets = [0, 64], sizes = [8, 32], strides = [1, 1]} : vector<8x96xf32> to vector<8x32xf32>
    %46 = arith.truncf %45 : vector<8x32xf32> to vector<8x32xbf16>
    %47 = vector.extract_strided_slice %46 {offsets = [0, 0], sizes = [8, 8], strides = [1, 1]} : vector<8x32xbf16> to vector<8x8xbf16>
    %48 = vector.shape_cast %47 : vector<8x8xbf16> to vector<1x8x8xbf16>
    %49 = vector.extract_strided_slice %46 {offsets = [0, 8], sizes = [8, 8], strides = [1, 1]} : vector<8x32xbf16> to vector<8x8xbf16>
    %50 = vector.shape_cast %49 : vector<8x8xbf16> to vector<1x8x8xbf16>
    %51 = vector.extract_strided_slice %46 {offsets = [0, 16], sizes = [8, 8], strides = [1, 1]} : vector<8x32xbf16> to vector<8x8xbf16>
    %52 = vector.shape_cast %51 : vector<8x8xbf16> to vector<1x8x8xbf16>
    %53 = vector.extract_strided_slice %46 {offsets = [0, 24], sizes = [8, 8], strides = [1, 1]} : vector<8x32xbf16> to vector<8x8xbf16>
    %54 = vector.shape_cast %53 : vector<8x8xbf16> to vector<1x8x8xbf16>
    %55 = vector.shape_cast %48 : vector<1x8x8xbf16> to vector<1x1x8x8xbf16>
    %56 = vector.shape_cast %50 : vector<1x8x8xbf16> to vector<1x1x8x8xbf16>
    %57 = vector.shape_cast %52 : vector<1x8x8xbf16> to vector<1x1x8x8xbf16>
    %58 = vector.shape_cast %54 : vector<1x8x8xbf16> to vector<1x1x8x8xbf16>
    %59 = tpu.concatenate %55, %56, %57, %58 in 0 : vector<1x1x8x8xbf16>, vector<1x1x8x8xbf16>, vector<1x1x8x8xbf16>, vector<1x1x8x8xbf16> -> vector<4x1x8x8xbf16>
    %60 = vector.shape_cast %59 : vector<4x1x8x8xbf16> to vector<4x8x8xbf16>
    "tpu.trace_start"() <{level = 10 : i32, message = "gqd,gkd->gqk"}> : () -> ()
    %cst_9 = arith.constant dense<0.000000e+00> : vector<4x8x8xf32>
    %61 = tpu.matmul %28, %44, %cst_9 {dimension_numbers = #tpu.dot_dimension_numbers<[2], [2], [1], [1], [0, 0, 0, 1, 1, 1], [0], [0]>} : vector<4x8x8xbf16>, vector<4x8x8xbf16>, vector<4x8x8xf32> -> vector<4x8x8xf32>
    "tpu.trace_stop"() : () -> ()
    %cst_10 = arith.constant 0.353553385 : f32
    %62 = vector.broadcast %cst_10 : f32 to vector<4x8x8xf32>
    %63 = arith.mulf %61, %62 : vector<4x8x8xf32>
    %cst_11 = arith.constant dense<0xFF800000> : vector<4x8xf32>
    %64 = vector.multi_reduction <maximumf>, %63, %cst_11 [2] : vector<4x8x8xf32> to vector<4x8xf32>
    %65 = vector.shape_cast %64 : vector<4x8xf32> to vector<4x8x1xf32>
    %66 = vector.broadcast %65 : vector<4x8x1xf32> to vector<4x8x8xf32>
    %67 = arith.subf %63, %66 : vector<4x8x8xf32>
    %68 = math.exp %67 : vector<4x8x8xf32>
    %cst_12 = arith.constant dense<0.000000e+00> : vector<4x8xf32>
    %69 = vector.multi_reduction <add>, %68, %cst_12 [2] : vector<4x8x8xf32> to vector<4x8xf32>
    %70 = vector.shape_cast %69 : vector<4x8xf32> to vector<4x8x1xf32>
    %71 = tpu.reciprocal %70 {approx = true} : vector<4x8x1xf32> -> vector<4x8x1xf32>
    %72 = vector.broadcast %71 : vector<4x8x1xf32> to vector<4x8x8xf32>
    %73 = arith.mulf %68, %72 : vector<4x8x8xf32>
    %74 = arith.truncf %73 : vector<4x8x8xf32> to vector<4x8x8xbf16>
    "tpu.trace_start"() <{level = 10 : i32, message = "gqk,gkd->gqd"}> : () -> ()
    %cst_13 = arith.constant dense<0.000000e+00> : vector<4x8x8xf32>
    %75 = tpu.matmul %74, %60, %cst_13 {dimension_numbers = #tpu.dot_dimension_numbers<[2], [1], [1], [2], [0, 0, 0, 1, 1, 2], [0], [0]>} : vector<4x8x8xbf16>, vector<4x8x8xbf16>, vector<4x8x8xf32> -> vector<4x8x8xf32>
    "tpu.trace_stop"() : () -> ()
    %76 = vector.extract_strided_slice %75 {offsets = [0, 0, 0], sizes = [1, 8, 8], strides = [1, 1, 1]} : vector<4x8x8xf32> to vector<1x8x8xf32>
    %77 = vector.shape_cast %76 : vector<1x8x8xf32> to vector<8x8xf32>
    %78 = vector.extract_strided_slice %75 {offsets = [1, 0, 0], sizes = [1, 8, 8], strides = [1, 1, 1]} : vector<4x8x8xf32> to vector<1x8x8xf32>
    %79 = vector.shape_cast %78 : vector<1x8x8xf32> to vector<8x8xf32>
    %80 = vector.extract_strided_slice %75 {offsets = [2, 0, 0], sizes = [1, 8, 8], strides = [1, 1, 1]} : vector<4x8x8xf32> to vector<1x8x8xf32>
    %81 = vector.shape_cast %80 : vector<1x8x8xf32> to vector<8x8xf32>
    %82 = vector.extract_strided_slice %75 {offsets = [3, 0, 0], sizes = [1, 8, 8], strides = [1, 1, 1]} : vector<4x8x8xf32> to vector<1x8x8xf32>
    %83 = vector.shape_cast %82 : vector<1x8x8xf32> to vector<8x8xf32>
    %84 = tpu.concatenate %77, %79, %81, %83 in 1 : vector<8x8xf32>, vector<8x8xf32>, vector<8x8xf32>, vector<8x8xf32> -> vector<8x32xf32>
    %85 = arith.truncf %84 : vector<8x32xf32> to vector<8x32xbf16>
    %c0_14 = arith.constant 0 : index
    %c0_15 = arith.constant 0 : index
    %c0_16 = arith.constant 0 : index
    %86 = vector.load %arg5[%c0_14, %c0_15, %c0_16] : memref<1x32x32xbf16, #tpu.memory_space<vmem>>, vector<1x32x32xbf16>
    %87 = vector.shape_cast %86 : vector<1x32x32xbf16> to vector<32x32xbf16>
    %cst_17 = arith.constant dense<0.000000e+00> : vector<8x32xf32>
    %88 = tpu.matmul %85, %87, %cst_17 {dimension_numbers = #tpu.dot_dimension_numbers<[1], [0], [0], [1], [0, 0, 1, 1], [], []>} : vector<8x32xbf16>, vector<32x32xbf16>, vector<8x32xf32> -> vector<8x32xf32>
    %c0_18 = arith.constant 0 : index
    %c0_19 = arith.constant 0 : index
    %c0_20 = arith.constant 0 : index
    %89 = vector.load %arg6[%c0_18, %c0_19, %c0_20] : memref<1x1x32xf32, #tpu.memory_space<vmem>>, vector<1x1x32xf32>
    %90 = vector.shape_cast %89 : vector<1x1x32xf32> to vector<1x32xf32>
    %91 = vector.broadcast %90 : vector<1x32xf32> to vector<8x32xf32>
    %92 = arith.addf %88, %91 : vector<8x32xf32>
    %93 = arith.addf %4, %92 : vector<8x32xf32>
    %c0_21 = arith.constant 0 : index
    %c0_22 = arith.constant 0 : index
    %c0_23 = arith.constant 0 : index
    %94 = vector.load %arg7[%c0_21, %c0_22, %c0_23] : memref<1x1x32xf32, #tpu.memory_space<vmem>>, vector<1x1x32xf32>
    %95 = vector.shape_cast %94 : vector<1x1x32xf32> to vector<1x32xf32>
    %c0_24 = arith.constant 0 : index
    %c0_25 = arith.constant 0 : index
    %c0_26 = arith.constant 0 : index
    %96 = vector.load %arg8[%c0_24, %c0_25, %c0_26] : memref<1x1x32xf32, #tpu.memory_space<vmem>>, vector<1x1x32xf32>
    %97 = vector.shape_cast %96 : vector<1x1x32xf32> to vector<1x32xf32>
    %cst_27 = arith.constant dense<0.000000e+00> : vector<8xf32>
    %98 = vector.multi_reduction <add>, %93, %cst_27 [1] : vector<8x32xf32> to vector<8xf32>
    %99 = vector.shape_cast %98 : vector<8xf32> to vector<8x1xf32>
    %cst_28 = arith.constant 3.200000e+01 : f32
    %100 = vector.broadcast %cst_28 : f32 to vector<8x1xf32>
    %101 = arith.divf %99, %100 : vector<8x1xf32>
    %102 = vector.broadcast %101 : vector<8x1xf32> to vector<8x32xf32>
    %103 = arith.subf %93, %102 : vector<8x32xf32>
    %104 = arith.mulf %103, %103 : vector<8x32xf32>
    %cst_29 = arith.constant dense<0.000000e+00> : vector<8xf32>
    %105 = vector.multi_reduction <add>, %104, %cst_29 [1] : vector<8x32xf32> to vector<8xf32>
    %106 = vector.shape_cast %105 : vector<8xf32> to vector<8x1xf32>
    %cst_30 = arith.constant 3.200000e+01 : f32
    %107 = vector.broadcast %cst_30 : f32 to vector<8x1xf32>
    %108 = arith.divf %106, %107 : vector<8x1xf32>
    %cst_31 = arith.constant 9.99999996E-13 : f32
    %109 = vector.broadcast %cst_31 : f32 to vector<8x1xf32>
    %110 = arith.addf %108, %109 : vector<8x1xf32>
    %111 = math.rsqrt %110 : vector<8x1xf32>
    %112 = vector.broadcast %101 : vector<8x1xf32> to vector<8x32xf32>
    %113 = arith.subf %93, %112 : vector<8x32xf32>
    %114 = vector.broadcast %111 : vector<8x1xf32> to vector<8x32xf32>
    %115 = arith.mulf %113, %114 : vector<8x32xf32>
    %116 = vector.broadcast %95 : vector<1x32xf32> to vector<8x32xf32>
    %117 = arith.mulf %116, %115 : vector<8x32xf32>
    %118 = vector.broadcast %97 : vector<1x32xf32> to vector<8x32xf32>
    %119 = arith.addf %117, %118 : vector<8x32xf32>
    %120 = arith.truncf %119 : vector<8x32xf32> to vector<8x32xbf16>
    %c0_32 = arith.constant 0 : index
    %c0_33 = arith.constant 0 : index
    %c0_34 = arith.constant 0 : index
    %121 = vector.load %arg9[%c0_32, %c0_33, %c0_34] : memref<1x32x64xbf16, #tpu.memory_space<vmem>>, vector<1x32x64xbf16>
    %122 = vector.shape_cast %121 : vector<1x32x64xbf16> to vector<32x64xbf16>
    %cst_35 = arith.constant dense<0.000000e+00> : vector<8x64xf32>
    %123 = tpu.matmul %120, %122, %cst_35 {dimension_numbers = #tpu.dot_dimension_numbers<[1], [0], [0], [1], [0, 0, 1, 1], [], []>} : vector<8x32xbf16>, vector<32x64xbf16>, vector<8x64xf32> -> vector<8x64xf32>
    %c0_36 = arith.constant 0 : index
    %c0_37 = arith.constant 0 : index
    %c0_38 = arith.constant 0 : index
    %124 = vector.load %arg10[%c0_36, %c0_37, %c0_38] : memref<1x1x64xf32, #tpu.memory_space<vmem>>, vector<1x1x64xf32>
    %125 = vector.shape_cast %124 : vector<1x1x64xf32> to vector<1x64xf32>
    %126 = vector.broadcast %125 : vector<1x64xf32> to vector<8x64xf32>
    %127 = arith.addf %123, %126 : vector<8x64xf32>
    %cst_39 = arith.constant 0.000000e+00 : f32
    %128 = vector.broadcast %cst_39 : f32 to vector<8x64xf32>
    %129 = arith.maximumf %127, %128 : vector<8x64xf32>
    %130 = arith.truncf %129 : vector<8x64xf32> to vector<8x64xbf16>
    %c0_40 = arith.constant 0 : index
    %c0_41 = arith.constant 0 : index
    %c0_42 = arith.constant 0 : index
    %131 = vector.load %arg11[%c0_40, %c0_41, %c0_42] : memref<1x64x32xbf16, #tpu.memory_space<vmem>>, vector<1x64x32xbf16>
    %132 = vector.shape_cast %131 : vector<1x64x32xbf16> to vector<64x32xbf16>
    %cst_43 = arith.constant dense<0.000000e+00> : vector<8x32xf32>
    %133 = tpu.matmul %130, %132, %cst_43 {dimension_numbers = #tpu.dot_dimension_numbers<[1], [0], [0], [1], [0, 0, 1, 1], [], []>} : vector<8x64xbf16>, vector<64x32xbf16>, vector<8x32xf32> -> vector<8x32xf32>
    %c0_44 = arith.constant 0 : index
    %c0_45 = arith.constant 0 : index
    %c0_46 = arith.constant 0 : index
    %134 = vector.load %arg12[%c0_44, %c0_45, %c0_46] : memref<1x1x32xf32, #tpu.memory_space<vmem>>, vector<1x1x32xf32>
    %135 = vector.shape_cast %134 : vector<1x1x32xf32> to vector<1x32xf32>
    %136 = vector.broadcast %135 : vector<1x32xf32> to vector<8x32xf32>
    %137 = arith.addf %133, %136 : vector<8x32xf32>
    %138 = arith.addf %119, %137 : vector<8x32xf32>
    %c0_47 = arith.constant 0 : index
    %c0_48 = arith.constant 0 : index
    %c0_49 = arith.constant 0 : index
    %139 = vector.load %arg13[%c0_47, %c0_48, %c0_49] : memref<1x1x32xf32, #tpu.memory_space<vmem>>, vector<1x1x32xf32>
    %140 = vector.shape_cast %139 : vector<1x1x32xf32> to vector<1x32xf32>
    %c0_50 = arith.constant 0 : index
    %c0_51 = arith.constant 0 : index
    %c0_52 = arith.constant 0 : index
    %141 = vector.load %arg14[%c0_50, %c0_51, %c0_52] : memref<1x1x32xf32, #tpu.memory_space<vmem>>, vector<1x1x32xf32>
    %142 = vector.shape_cast %141 : vector<1x1x32xf32> to vector<1x32xf32>
    %cst_53 = arith.constant dense<0.000000e+00> : vector<8xf32>
    %143 = vector.multi_reduction <add>, %138, %cst_53 [1] : vector<8x32xf32> to vector<8xf32>
    %144 = vector.shape_cast %143 : vector<8xf32> to vector<8x1xf32>
    %cst_54 = arith.constant 3.200000e+01 : f32
    %145 = vector.broadcast %cst_54 : f32 to vector<8x1xf32>
    %146 = arith.divf %144, %145 : vector<8x1xf32>
    %147 = vector.broadcast %146 : vector<8x1xf32> to vector<8x32xf32>
    %148 = arith.subf %138, %147 : vector<8x32xf32>
    %149 = arith.mulf %148, %148 : vector<8x32xf32>
    %cst_55 = arith.constant dense<0.000000e+00> : vector<8xf32>
    %150 = vector.multi_reduction <add>, %149, %cst_55 [1] : vector<8x32xf32> to vector<8xf32>
    %151 = vector.shape_cast %150 : vector<8xf32> to vector<8x1xf32>
    %cst_56 = arith.constant 3.200000e+01 : f32
    %152 = vector.broadcast %cst_56 : f32 to vector<8x1xf32>
    %153 = arith.divf %151, %152 : vector<8x1xf32>
    %cst_57 = arith.constant 9.99999996E-13 : f32
    %154 = vector.broadcast %cst_57 : f32 to vector<8x1xf32>
    %155 = arith.addf %153, %154 : vector<8x1xf32>
    %156 = math.rsqrt %155 : vector<8x1xf32>
    %157 = vector.broadcast %146 : vector<8x1xf32> to vector<8x32xf32>
    %158 = arith.subf %138, %157 : vector<8x32xf32>
    %159 = vector.broadcast %156 : vector<8x1xf32> to vector<8x32xf32>
    %160 = arith.mulf %158, %159 : vector<8x32xf32>
    %161 = vector.broadcast %140 : vector<1x32xf32> to vector<8x32xf32>
    %162 = arith.mulf %161, %160 : vector<8x32xf32>
    %163 = vector.broadcast %142 : vector<1x32xf32> to vector<8x32xf32>
    %164 = arith.addf %162, %163 : vector<8x32xf32>
    %165 = vector.shape_cast %164 : vector<8x32xf32> to vector<1x8x32xf32>
    %c0_58 = arith.constant 0 : index
    %c0_59 = arith.constant 0 : index
    %c0_60 = arith.constant 0 : index
    %166 = vector.load %arg15[%c0_58, %c0_59, %c0_60] : memref<1x8x32xf32, #tpu.memory_space<vmem>>, vector<1x8x32xf32>
    tpu.vector_store %arg15[%c0_58, %c0_59, %c0_60], %165 {strides = array<i32>} : memref<1x8x32xf32, #tpu.memory_space<vmem>>, vector<1x8x32xf32>,
    return
  }
  func.func @transform_0(%arg0: i32, %arg1: i32) -> (i32, i32, i32) {
    %c0_i32 = arith.constant 0 : i32
    %c0_i32_0 = arith.constant 0 : i32
    %c0_i32_1 = arith.constant 0 : i32
    return %arg0, %c0_i32, %c0_i32_0 : i32, i32, i32
  }
  func.func @transform_1(%arg0: i32, %arg1: i32) -> (i32, i32, i32) {
    %c0_i32 = arith.constant 0 : i32
    %c0_i32_0 = arith.constant 0 : i32
    %c0_i32_1 = arith.constant 0 : i32
    return %arg1, %c0_i32, %c0_i32_0 : i32, i32, i32
  }
  func.func @transform_2(%arg0: i32, %arg1: i32) -> (i32, i32, i32) {
    %c0_i32 = arith.constant 0 : i32
    %c0_i32_0 = arith.constant 0 : i32
    %c0_i32_1 = arith.constant 0 : i32
    return %arg1, %c0_i32, %c0_i32_0 : i32, i32, i32
  }
  func.func @transform_3(%arg0: i32, %arg1: i32) -> (i32, i32, i32) {
    %c0_i32 = arith.constant 0 : i32
    %c0_i32_0 = arith.constant 0 : i32
    %c0_i32_1 = arith.constant 0 : i32
    return %arg1, %c0_i32, %c0_i32_0 : i32, i32, i32
  }
  func.func @transform_4(%arg0: i32, %arg1: i32) -> (i32, i32, i32) {
    %c0_i32 = arith.constant 0 : i32
    %c0_i32_0 = arith.constant 0 : i32
    %c0_i32_1 = arith.constant 0 : i32
    return %arg1, %c0_i32, %c0_i32_0 : i32, i32, i32
  }
  func.func @transform_5(%arg0: i32, %arg1: i32) -> (i32, i32, i32) {
    %c0_i32 = arith.constant 0 : i32
    %c0_i32_0 = arith.constant 0 : i32
    %c0_i32_1 = arith.constant 0 : i32
    return %arg1, %c0_i32, %c0_i32_0 : i32, i32, i32
  }
  func.func @transform_6(%arg0: i32, %arg1: i32) -> (i32, i32, i32) {
    %c0_i32 = arith.constant 0 : i32
    %c0_i32_0 = arith.constant 0 : i32
    %c0_i32_1 = arith.constant 0 : i32
    return %arg1, %c0_i32, %c0_i32_0 : i32, i32, i32
  }
  func.func @transform_7(%arg0: i32, %arg1: i32) -> (i32, i32, i32) {
    %c0_i32 = arith.constant 0 : i32
    %c0_i32_0 = arith.constant 0 : i32
    %c0_i32_1 = arith.constant 0 : i32
    return %arg1, %c0_i32, %c0_i32_0 : i32, i32, i32
  }
  func.func @transform_8(%arg0: i32, %arg1: i32) -> (i32, i32, i32) {
    %c0_i32 = arith.constant 0 : i32
    %c0_i32_0 = arith.constant 0 : i32
    %c0_i32_1 = arith.constant 0 : i32
    return %arg1, %c0_i32, %c0_i32_0 : i32, i32, i32
  }
  func.func @transform_9(%arg0: i32, %arg1: i32) -> (i32, i32, i32) {
    %c0_i32 = arith.constant 0 : i32
    %c0_i32_0 = arith.constant 0 : i32
    %c0_i32_1 = arith.constant 0 : i32
    return %arg1, %c0_i32, %c0_i32_0 : i32, i32, i32
  }
  func.func @transform_10(%arg0: i32, %arg1: i32) -> (i32, i32, i32) {
    %c0_i32 = arith.constant 0 : i32
    %c0_i32_0 = arith.constant 0 : i32
    %c0_i32_1 = arith.constant 0 : i32
    return %arg1, %c0_i32, %c0_i32_0 : i32, i32, i32
  }
  func.func @transform_11(%arg0: i32, %arg1: i32) -> (i32, i32, i32) {
    %c0_i32 = arith.constant 0 : i32
    %c0_i32_0 = arith.constant 0 : i32
    %c0_i32_1 = arith.constant 0 : i32
    return %arg1, %c0_i32, %c0_i32_0 : i32, i32, i32
  }
  func.func @transform_12(%arg0: i32, %arg1: i32) -> (i32, i32, i32) {
    %c0_i32 = arith.constant 0 : i32
    %c0_i32_0 = arith.constant 0 : i32
    %c0_i32_1 = arith.constant 0 : i32
    return %arg1, %c0_i32, %c0_i32_0 : i32, i32, i32
  }
  func.func @transform_13(%arg0: i32, %arg1: i32) -> (i32, i32, i32) {
    %c0_i32 = arith.constant 0 : i32
    %c0_i32_0 = arith.constant 0 : i32
    %c0_i32_1 = arith.constant 0 : i32
    return %arg0, %c0_i32, %c0_i32_0 : i32, i32, i32
  }
}

</mosaic_0001>

<bundles_post_ra>
// kernel: tpu_custom_call.1
= control target key start
LH: loop header
LB: loop body
LE: loop exit
PB: predicated region body
PF: predicated region fallthrough
CT: control target
= control target key end

     0   :  { %s2599_s0 = inlined_call_operand.hbm [shape: f32[2,8,32], index: 0, kind: input, shape index: {}, may-alias: {0,13}]   ;;  %s2600_s1 = inlined_call_operand.vmem [shape: bf16[2,32,96], index: 1, kind: input, shape index: {}]   ;;  %s2601_s2 = inlined_call_operand.vmem [shape: f32[2,1,96], index: 2, kind: input, shape index: {}]   ;;  %s2602_s3 = inlined_call_operand.vmem [shape: bf16[2,32,32], index: 3, kind: input, shape index: {}]   ;;  %s2603_s4 = inlined_call_operand.vmem [shape: f32[2,1,32], index: 4, kind: input, shape index: {}]   ;;  %s2604_s5 = inlined_call_operand.vmem [shape: f32[2,1,32], index: 5, kind: input, shape index: {}]   ;;  %s2605_s6 = inlined_call_operand.vmem [shape: f32[2,1,32], index: 6, kind: input, shape index: {}]   ;;  %s2606_s7 = inlined_call_operand.vmem [shape: bf16[2,32,64], index: 7, kind: input, shape index: {}]   ;;  %s2607_s8 = inlined_call_operand.vmem [shape: f32[2,1,64], index: 8, kind: input, shape index: {}]   ;;  %s2608_s9 = inlined_call_operand.vmem [shape: bf16[2,64,32], index: 9, kind: input, shape index: {}]   ;;  %s2609_s10 = inlined_call_operand.vmem [shape: f32[2,1,32], index: 10, kind: input, shape index: {}]   ;;  %s2610_s11 = inlined_call_operand.vmem [shape: f32[2,1,32], index: 11, kind: input, shape index: {}]   ;;  %s2611_s12 = inlined_call_operand.vmem [shape: f32[2,1,32], index: 12, kind: input, shape index: {}]   ;;  %s2612_s13 = inlined_call_operand.hbm [shape: f32[2,8,32], index: 13, kind: output, shape index: {}, may-alias: {0,13}]  }
   0x1   :  { %2628 = sst [smem:[#allocation22_spill]] %s2599_s0 }
   0x2   :  { %2629 = sst [smem:[#allocation23_spill]] %s2600_s1 }
   0x3   :  { %2630 = sst [smem:[#allocation24_spill]] %s2602_s3 }
   0x4   :  { %2631 = sst [smem:[#allocation25_spill]] %s2606_s7 }
   0x5   :  { %2632 = sst [smem:[#allocation26_spill]] %s2611_s12 }
   0x6   :  { %2633 = sst [smem:[#allocation27_spill]] %s2612_s13 }
   0x7   :  { %18 = vsyncpa [#allocation3], 0 }
   0x8   :  { %20 = vsyncpa [#allocation3 + $0x1], 0 }
   0x9   :  { %21 = vsyncpa [#allocation4], 0 }
   0xa   :  { %23 = vsyncpa [#allocation4 + $0x1], 0  ;;  %s2196_s25 = smov 0   ;;  %s2198_s26 = smov 0  }
   0xb   :  { %s2200_s27 = smov 0   ;;  %s2202_s28 = smov 0  }
   0xc   :  { %s2204_s29 = smov 0   ;;  %s2206_s30 = smov 0  }
   0xd   :  { %s2208_s14 = smov 0   ;;  %s2210_s15 = smov 0  }
   0xe LB: > { %2634 = sst [smem:[#allocation8_spill]] %s2084_s25  ;;  %s1696_s16 = sadd.s32 4294967295, %s2112_s15   ;;  %s2112_s15 = sphi %s2210_s15, %s29_s15   ;;  %s2108_s14 = sphi %s2208_s14, %s2682_s14   ;;  %s2104_s30 = sphi %s2206_s30, %s2681_s30   ;;  %s2100_s29 = sphi %s2204_s29, %s2680_s29   ;;  %s2096_s28 = sphi %s2202_s28, %s2679_s28   ;;  %s2092_s27 = sphi %s2200_s27, %s2678_s27   ;;  %s2088_s26 = sphi %s2198_s26, %s2677_s26   ;;  %s2084_s25 = sphi %s2196_s25, %s2676_s25  }
   0xf   : > { %2635 = sst [smem:[#allocation9_spill]] %s2088_s26  ;;  %s1697_s17 = sadd.s32 4294967294, %s2112_s15  }
  0x10   : > { %2636 = sst [smem:[#allocation10_spill]] %s2092_s27  ;;  %s38_s18 = sadd.s32 1, %s2104_s30 }
  0x11   : > { %2637 = sst [smem:[#allocation11_spill]] %s2096_s28  ;;  %s41_s19 = sadd.s32 1, %s2108_s14 }
  0x12   : > { %2638 = sst [smem:[#allocation12_spill]] %s2100_s29  ;;  %p39_p0 = scmp.ge.s32.totalorder %s38_s18, 2 }
  0x13   : > { %2639 = sst [smem:[#allocation13_spill]] %s2104_s30  ;;  %s48_s20 = sadd.s32 1, %s2092_s27 }
  0x14   : > { %2640 = sst [smem:[#allocation14_spill]] %s2108_s14  ;;  %p55_p1 = scmp.ne.s32.totalorder %s2092_s27, %s2088_s26 }
  0x15   : > { %2641 = sst [smem:[#allocation15_spill]] %s2112_s15  ;;  %p56_p2 = scmp.eq.s32.totalorder %s2112_s15, 0 }
  0x16   : > { %s2684_s18 = smov (%p39_p0, %s38_s18), 0  ;;  %s2686_s19 = smov (!%p39_p0, %s41_s19), %s2108_s14 }
  0x17   : > { %2642 = sst [smem:[#allocation16_spill]] %s2684_s18  ;;  %p2247_p3 = por %p56_p2, %p55_p1 }
  0x18   : > { %p61_p4 = scmp.ne.s32.totalorder %s2088_s26, %s2084_s25  ;;  %p43_p5 = scmp.ge.s32.totalorder %s2686_s19, 2 }
  0x19   : > { %p62_p6 = scmp.eq.s32.totalorder %s1696_s16, 0  ;;  %p397_p7 = scmp.eq.s32.totalorder %s1696_s16, 3 }
  0x1a   : > { %p403_p8 = scmp.eq.s32.totalorder %s1697_s17, 3  ;;  %s2688_s19 = smov (%p43_p5, %s2686_s19), 0 }
  0x1b   : > { %2644 = sst [smem:[#allocation17_spill]] %s2688_s19  ;;  %p2255_p9 = por %p62_p6, %p61_p4 }
  0x1c   : > { %p2259_p10 = por %p397_p7, %p55_p1  ;;  %s45_s24 = ssub.s32 %s2108_s14, %s2688_s19 }
  0x1d   : > { %p2265_p11 = por %p403_p8, %p61_p4  ;;  %p46_p12 = scmp.eq.s32.totalorder %s45_s24, 0 }
  0x1e   : > { %s2646_s23 = scalar_select %p2259_p10, 1, 0 }
  0x1f   : > { %s2648_s18 = scalar_select %p2265_p11, 1, 0 }
  0x20   : > { %2647 = sst [smem:[#allocation18_spill]] %s2646_s23  ;;  %p1878_p13 = scmp.lt.s32.totalorder %s2112_s15, 4 }
  0x21   : > { %2649 = sst [smem:[#allocation19_spill]] %s2648_s18  ;;  %s423_s16 = sand.u32 1, %s2092_s27  }
  0x22   : > { %s2272_s17 = scalar_select %p46_p12, %s2092_s27, %s48_s20  }
  0x23   : > { %s1700_s30 = sshll.u32 %s423_s16, 3  ;;  %s1701_s25 = sshll.u32 %s2108_s14, 7 }
  0x24   : > { %2650 = sst [smem:[#allocation20_spill]] %s2272_s17  ;;  %s2651_s0 = sld [smem:[#allocation22_spill]] }
  0x25   : > { %s427_s19 = scalar_lea.vmem [#allocation2], %s1700_s30  ;;  %p2284_p0 = pnand %p1878_p13, %p2247_p3 }
  0x26   : > { %s434_s23 = sshll.u32 %s427_s19, 4  ;;  %s424_s13 = scalar_lea.sflag [#allocation3], %s423_s16  ;;  %s2280_s23 = int_to_ptr.vmem [resolvable:$true] %s434_s23 }
  0x27   : > { %p1986_p5 = pneg %p2284_p0 }
  0x2a   : > { %s2278_s12 = scalar_lea.hbm %s2651_s0, %s1701_s25  ;;  %s1989_s19 = scalar_lea.hbm %s2651_s0, 256 }
  0x2b   : > { %s1984_s25 = scalar_lea.hbm %s2278_s12, 128  ;;  %p1990_p3 = scmp.lt.u32.totalorder %s2278_s12, %s2651_s0 }
  0x2c   : > { %p1985_p4 = scmp.ne.s32.totalorder %s2278_s12, %s1984_s25  ;;  %p1991_p8 = scmp.lt.u32.totalorder %s1989_s19, %s1984_s25 }
  0x2d   : > { %p1993_p13 = scmp.lt.u32.totalorder %s1984_s25, %s2278_s12 }
  0x2e   : > { %p1987_p6 = pnand %p1986_p5, %p1985_p4  ;;  %p1992_p12 = por %p1991_p8, %p1990_p3 }
  0x30   : > { %p1988_p7 = pneg %p1987_p6  ;;  %p1994_p1 = por %p1993_p13, %p1992_p12 }
  0x32   : > { %p1995_p2 = pnand %p1994_p1, %p1988_p7 }
  0x34   : > { %1998 = shalt.err (!%p1995_p2)
}
  0x35   : > { %s1999_s16 = scalar_lea.vmem %s2280_s23, 128  ;;  %s2114_s29 = smov [#allocation2]  }
  0x36   : > { %p2000_p4 = scmp.ne.s32.totalorder %s2280_s23, %s1999_s16  ;;  %s2004_s30 = sshll.u32 %s2114_s29, 4  ;;  %s2005_s30 = int_to_ptr.vmem [resolvable:$false] %s2004_s30 }
  0x37   : > { %s2006_s20 = scalar_lea.vmem %s2005_s30, 256  ;;  %p2007_p10 = scmp.lt.s32.totalorder %s2280_s23, %s2005_s30 }
  0x38   : > { %p2002_p6 = pnand %p2000_p4, %p1986_p5  ;;  %p2008_p3 = scmp.lt.s32.totalorder %s2006_s20, %s1999_s16 }
  0x3a   : > { %p2003_p11 = pneg %p2002_p6  ;;  %p2009_p8 = por %p2008_p3, %p2007_p10 }
  0x3c   : > { %p2010_p12 = pnand %p2009_p8, %p2003_p11 }
  0x3e   : > { %2013 = shalt.err (!%p2010_p12)
}
  0x3f   : > { %1873 = dma.hbm_to_vmem [thread:$0]  (!%p2284_p0), %s2278_s12, 128, %s2280_s23, %s424_s13  }
  0x40   : > { %p2653_p1 = scmp.lt.s32.totalorder %s2112_s15, 5  ;;  %p2654_p2 = scmp.ge.s32.totalorder %s2112_s15, 1 }
  0x42   : > { %p520_p5 = pnand %p2654_p2, %p2653_p1 }
  0x44   : > { %523 = sbr.rel (%p520_p5) target bundleno = 2722 (0xaa2), region = 72 }
  0x4b   : > { %s2320_s25 = sand.u32 1, %s2088_s26  }
  0x4c   : > { %2655 = sst [smem:[#allocation21_spill]] %s2320_s25  ;;  %s1703_s19 = sshll.u32 %s2320_s25, 3 }
  0x4d   : > { %s526_s21 = scalar_lea.sflag [#allocation3], %s2320_s25  ;;  %s529_s16 = scalar_lea.vmem [#allocation2], %s1703_s19 }
  0x4e   : > { %2075 = dma.done.wait (%p2255_p9), %s526_s21, 128  }
  0x4f   : > { %2077 = vsyncadd (%p2255_p9), %s526_s21, 4294967168  ;;  %p616_p10 = scmp.lt.s32.totalorder %s2096_s28, 1  ;;  %s2656_s1 = sld [smem:[#allocation23_spill]] }
  0x50   : > { %s2657_s3 = sld [smem:[#allocation24_spill]]  ;;  %s2658_s7 = sld [smem:[#allocation25_spill]] }
  0x51   : > { %s2330_s12 = scalar_select %p616_p10, %s2096_s28, 1 }
  0x52   : > { %s2659_s25 = sld [smem:[#allocation26_spill]]  ;;  %s2384_s0 = scalar_lea.vmem [#allocation5], %s1703_s19 }
  0x53   : > { %s1748_s23 = sshll.u32 %s2330_s12, 4  ;;  %s653_s28 = scalar_lea.vmem %s2609_s10, %s2330_s12 }
  0x54   : > { %s656_s22 = scalar_lea.vmem %s2610_s11, %s2330_s12  ;;  %s2660_s21 = sld [smem:[#allocation11_spill]] }
  0x55   : > { %s620_s20 = scalar_lea.vmem %s2656_s1, %s1748_s23  ;;  %s645_s1 = scalar_lea.vmem %s2607_s8, %s2330_s12 }
  0x56   : > { %s2343_s14 = scalar_lea.vmem %s2657_s3, %s1748_s23  ;;  %s2360_s30 = scalar_lea.vmem %s2658_s7, %s1748_s23 }
  0x57   : > { %s1751_s3 = sshll.u32 %s2330_s12, 5 }
  0x58   : > { %s2370_s26 = scalar_lea.vmem %s2608_s9, %s1751_s3  ;;  %s659_s7 = scalar_lea.vmem %s2659_s25, %s2330_s12 }
  0x5a   : > { %p1713_p9 = scmp.ne.s32.totalorder %s2660_s21, 0 }
  0x5b   : > { %v665_v0 = vld [vmem:[%s529_s16] sm:$0xff] (!%p1713_p9)  ;;  %vm666_vm0 = vcmask (!%p1713_p9), 261120  }
  0x5c   : > { %664 = sbr.rel (%p1713_p9) target bundleno = 99 (0x63), region = 80  ;;  %667 = vst.msk [vmem:[%s2384_s0] sm:$0xff] (!%p1713_p9), %vm666_vm0, %v665_v0 }
  0x63 PF: > { %v1954_v1 = vld [vmem:[%s620_s20] sm:$0xff]   ;;  %v2115_v2 = vmov 0.0   ;;  %v1955_v3 = vld [vmem:[%s620_s20 + $0x8] sm:$0xff]   ;;  %vm2116_vm1 = vmmov 0   ;;  %v2393_v4 = vld [vmem:[%s2384_s0] sm:$0xff]  ;;  %vm693_vm2 = vcmask 261120   ;;  %s2661_s19 = scalar_lea.vmem %s2601_s2, %s2330_s12  ;;  %s2662_s29 = scalar_lea.vmem %s2603_s4, %s2330_s12 }
  0x64   : > { %1782 = vmatprep.subr.bf16.mxu0 %v2115_v2  ;;  %1790 = vmatprep.subr.bf16.mxu1 %v2115_v2  ;;  %v669_v5 = vpack.c.bf16 %v2393_v4, %v2393_v4  ;;  %v1714_v6 = vld [vmem:[%s2661_s19] ss:$0 sm:$0xff]  ;;  %s2117_s16 = smov 104   ;;  %s2118_s20 = smov 120   ;;  %vm747_vm3 = vcmask 64512   ;;  %vm995_vm4 = vcmask 1043456  }
  0x65   : > { %1783 = vmatpush3.bf16.msra.mxu0 %v1954_v1  ;;  %1786 = vmatprep.mubr.msk.bf16.mxu0 %vm2116_vm1, %v2115_v2  ;;  %s2119_s13 = smov 96   ;;  %s2120_s27 = smov 112   ;;  %vm1196_vm5 = vcmask 130048   ;;  %vm1198_vm6 = vcmask 195584   ;;  %vm1406_vm7 = vcmask 523264  }
  0x66   : > { %1784 = vmatprep.subr.bf16.mxu0 %v2115_v2  ;;  %1792 = vmatprep.mubr.msk.bf16.mxu1 %vm2116_vm1, %v2115_v2  ;;  %s2121_s17 = smov 64   ;;  %s2122_s15 = smov 8  }
  0x67   : > { %s2123_s18 = smov 16   ;;  %s2124_s24 = smov 24  }
  0x68   : > { %s2663_s3 = scalar_lea.vmem %s2604_s5, %s2330_s12  ;;  %s2669_s25 = sld [smem:[#allocation27_spill]] }
  0x69   : > { %1785 = vmatpush3.bf16.msra.mxu0 %v1955_v3 }
  0x6a   : > { %1796 = vmatprep.subr.bf16.mxu0 %v2115_v2 }
  0x6c   : > { %1787 = vmatmul.mubr.msk.bf16.vlgmr.msra.gmra.mrb[0].mxu0 %vm693_vm2, %v669_v5 }
  0x6d   : > { %1798 = vmatprep.mubr.msk.bf16.mxu0 %vm2116_vm1, %v2115_v2 }
  0x6e   : > { %s2670_s19 = smov %s2669_s25 }
 0x13f   : > { %v731_v7 = vpop.f32.mrb[0].mxu0 }
 0x140   : > { %v732_v8 = vadd.f32 %v1714_v6, %v731_v7  ;;  %v1788_v9 = vpop.f32.mrb[1].mxu0 }
 0x141   : > { %v734_v10 = vpop.f32.mrb[2].mxu0 }
 0x142   : > { %v2409_v11 = vpack.c.bf16 %v732_v8, %v732_v8  ;;  %v1789_v12 = vpop.f32.mrb[3].mxu0 }
 0x144   : > { %743 = vrot.lane.b32.xlu1 %v2409_v11, %s2117_s16  ;;  %739 = vrot.lane.b32.xlu0 %v2409_v11, %s2118_s20  ;;  %s2664_s16 = scalar_lea.vmem %s2605_s6, %s2330_s12 }
 0x148   : > { %745 = vrot.lane.b32.xlu1 %v2409_v11, %s2119_s13  ;;  %741 = vrot.lane.b32.xlu0 %v2409_v11, %s2120_s27 }
 0x1b6   : > { %v2415_v13 = vpop.permute.xlu1 %743  ;;  %v740_v14 = vpop.permute.xlu0 %739 }
 0x1b7   : > { %794 = vrot.lane.b32.xlu0 %v740_v14, %s2119_s13 }
 0x1ba   : > { %v746_v15 = vpop.permute.xlu1 %745  ;;  %v2417_v16 = vpop.permute.xlu0 %741 }
 0x1bb   : > { %890 = vrot.lane.b32.xlu0 %v2415_v13, %s2119_s13  ;;  %842 = vrot.lane.b32.xlu1 %v2417_v16, %s2119_s13  ;;  %v752_v17 = vsel %vm747_vm3, %v746_v15, 0 }
 0x1bc   : > { %1791 = vmatpush3.bf16.xpose.msra.mxu1 %v752_v17 }
 0x1bd   : > { %1802 = vmatprep.subr.bf16.mxu1 %v2115_v2 }
 0x1c3   : > { %1793 = vmatmul.mubr.msk.bf16.vlgmr.msra.gmra.mrb[0].mxu1 %vm747_vm3, %v2409_v11 }
 0x1c4   : > { %1804 = vmatprep.mubr.msk.bf16.mxu1 %vm2116_vm1, %v2115_v2 }
 0x229   : > { %v795_v18 = vpop.permute.xlu0 %794 }
 0x22a   : > { %v800_v19 = vsel %vm747_vm3, %v795_v18, 0 }
 0x22b   : > { %1797 = vmatpush3.bf16.xpose.msra.mxu0 %v800_v19 }
 0x22c   : > { %1808 = vmatprep.subr.bf16.mxu0 %v2115_v2 }
 0x22d   : > { %v843_v20 = vpop.permute.xlu1 %842  ;;  %v891_v22 = vpop.permute.xlu0 %890 }
 0x22e   : > { %v848_v21 = vsel %vm747_vm3, %v843_v20, 0  ;;  %v896_v23 = vsel %vm747_vm3, %v891_v22, 0 }
 0x22f   : > { %1803 = vmatpush3.bf16.xpose.msra.mxu1 %v848_v21 }
 0x230   : > { %1814 = vmatprep.subr.bf16.mxu1 %v2115_v2 }
 0x232   : > { %1799 = vmatmul.mubr.msk.bf16.vlgmr.msra.gmra.mrb[4].mxu0 %vm747_vm3, %v740_v14 }
 0x233   : > { %1809 = vmatpush3.bf16.xpose.msra.mxu0 %v896_v23  ;;  %1810 = vmatprep.mubr.msk.bf16.mxu0 %vm2116_vm1, %v2115_v2 }
 0x234   : > { %1820 = vmatprep.subr.bf16.mxu0 %v2115_v2 }
 0x236   : > { %1805 = vmatmul.mubr.msk.bf16.vlgmr.msra.gmra.mrb[4].mxu1 %vm747_vm3, %v2417_v16 }
 0x237   : > { %1816 = vmatprep.mubr.msk.bf16.mxu1 %vm2116_vm1, %v2115_v2 }
 0x23a   : > { %1811 = vmatmul.mubr.msk.bf16.vlgmr.msra.gmra.mrb[8].mxu0 %vm747_vm3, %v2415_v13 }
 0x23b   : > { %1822 = vmatprep.mubr.msk.bf16.mxu0 %vm2116_vm1, %v2115_v2 }
 0x296   : > { %v788_v24 = vpop.f32.mrb[0].mxu1 }
 0x297   : > { %v938_v25 = vmul.f32 0.35355338, %v788_v24  ;;  %v1794_v26 = vpop.f32.mrb[1].mxu1 }
 0x298   : > { %v791_v27 = vpop.f32.mrb[2].mxu1 }
 0x299   : > { %v1795_v28 = vpop.f32.mrb[3].mxu1  ;;  %v942_v29 = vsel %vm747_vm3, %v938_v25, -inf }
 0x29a   : > { %943 = vmax.xlane.f32.xlu1 %v942_v29 }
 0x305   : > { %v836_v30 = vpop.f32.mrb[4].mxu0 }
 0x306   : > { %v939_v31 = vmul.f32 0.35355338, %v836_v30  ;;  %v1800_v32 = vpop.f32.mrb[5].mxu0 }
 0x307   : > { %v839_v33 = vpop.f32.mrb[6].mxu0 }
 0x308   : > { %v1801_v34 = vpop.f32.mrb[7].mxu0  ;;  %v945_v35 = vsel %vm747_vm3, %v939_v31, -inf }
 0x309   : > { %v884_v36 = vpop.f32.mrb[4].mxu1  ;;  %946 = vmax.xlane.f32.xlu0 %v945_v35  ;;  %v1956_v34 = vld [vmem:[%s2343_s14] sm:$0xff]   ;;  %v1957_v35 = vld [vmem:[%s2343_s14 + $0x8] sm:$0xff]  }
 0x30a   : > { %v940_v37 = vmul.f32 0.35355338, %v884_v36  ;;  %v1806_v38 = vpop.f32.mrb[5].mxu1 }
 0x30b   : > { %v887_v39 = vpop.f32.mrb[6].mxu1 }
 0x30c   : > { %v1807_v40 = vpop.f32.mrb[7].mxu1  ;;  %v948_v41 = vsel %vm747_vm3, %v940_v37, -inf }
 0x30d   : > { %949 = vmax.xlane.f32.xlu0 %v948_v41  ;;  %v932_v42 = vpop.f32.mrb[8].mxu0 }
 0x30e   : > { %v941_v43 = vmul.f32 0.35355338, %v932_v42  ;;  %v1812_v44 = vpop.f32.mrb[9].mxu0 }
 0x30f   : > { %v935_v45 = vpop.f32.mrb[10].mxu0 }
 0x310   : > { %v1813_v46 = vpop.f32.mrb[11].mxu0  ;;  %v951_v47 = vsel %vm747_vm3, %v941_v43, -inf }
 0x311   : > { %952 = vmax.xlane.f32.xlu1 %v951_v47 }
 0x322   : > { %1039 = vrot.lane.b32.xlu1 %v740_v14, %s2121_s17 }
 0x323   : > { %990 = vrot.lane.b32.xlu0 %v2409_v11, %s2121_s17 }
 0x327   : > { %v944_v48 = vpop.xlane.xlu1 %943 }
 0x328   : > { %v954_v49 = vsub.f32 %v938_v25, %v944_v48 }
 0x32a   : > { %v958_v50 = vmul.f32 1.442695, %v954_v49 }
 0x32c   : > { %1964 = vpow2.f32 %v958_v50 }
 0x336   : > { %v1965_v51 = vpop.eup %1964 }
 0x337   : > { %v966_v52 = vsel %vm747_vm3, %v1965_v51, 0.0 }
 0x342   : > { %967 = vadd.xlane.f32.xlu0 %v966_v52 }
 0x396   : > { %v947_v53 = vpop.xlane.xlu0 %946 }
 0x397   : > { %v955_v54 = vsub.f32 %v939_v31, %v947_v53 }
 0x399   : > { %v960_v55 = vmul.f32 1.442695, %v955_v54 }
 0x39a   : > { %v950_v56 = vpop.xlane.xlu0 %949 }
 0x39b   : > { %1966 = vpow2.f32 %v960_v55  ;;  %v956_v57 = vsub.f32 %v940_v37, %v950_v56  ;;  %v1726_v55 = vld [vmem:[%s2662_s29] ss:$0 sm:$0xff] }
 0x39d   : > { %v962_v58 = vmul.f32 1.442695, %v956_v57 }
 0x39e   : > { %v991_v59 = vpop.permute.xlu0 %990  ;;  %v953_v60 = vpop.xlane.xlu1 %952 }
 0x39f   : > { %1968 = vpow2.f32 %v962_v58  ;;  %v997_v61 = vsel %vm995_vm4, %v991_v59, 0  ;;  %v957_v62 = vsub.f32 %v941_v43, %v953_v60 }
 0x3a0   : > { %1815 = vmatpush3.bf16.msra.mxu1 %v997_v61 }
 0x3a1   : > { %v964_v63 = vmul.f32 1.442695, %v957_v62  ;;  %1826 = vmatprep.subr.bf16.mxu1 %v2115_v2 }
 0x3a2   : > { %v1040_v0 = vpop.permute.xlu1 %1039 }
 0x3a3   : > { %1970 = vpow2.f32 %v964_v63  ;;  %v1045_v1 = vsel %vm995_vm4, %v1040_v0, 0 }
 0x3a4   : > { %1821 = vmatpush3.bf16.msra.mxu0 %v1045_v1 }
 0x3a5   : > { %v1967_v3 = vpop.eup %1966  ;;  %1832 = vmatprep.subr.bf16.mxu0 %v2115_v2 }
 0x3a6   : > { %v969_v5 = vsel %vm747_vm3, %v1967_v3, 0.0 }
 0x3a7   : > { %970 = vadd.xlane.f32.xlu1 %v969_v5 }
 0x3a9   : > { %v1969_v6 = vpop.eup %1968 }
 0x3aa   : > { %v972_v7 = vsel %vm747_vm3, %v1969_v6, 0.0 }
 0x3ab   : > { %973 = vadd.xlane.f32.xlu0 %v972_v7  ;;  %v1959_v7 = vld [vmem:[%s2360_s30 + $0x8] sm:$0xff]  }
 0x3ad   : > { %v1971_v8 = vpop.eup %1970 }
 0x3ae   : > { %v975_v9 = vsel %vm747_vm3, %v1971_v8, 0.0 }
 0x3af   : > { %976 = vadd.xlane.f32.xlu1 %v975_v9 }
 0x3c0   : > { %1087 = vrot.lane.b32.xlu1 %v2417_v16, %s2121_s17 }
 0x3c1   : > { %1135 = vrot.lane.b32.xlu0 %v2415_v13, %s2121_s17 }
 0x3cf   : > { %v968_v10 = vpop.xlane.xlu0 %967 }
 0x3d0   : > { %1972 = vrcp.f32 %v968_v10 }
 0x3da   : > { %v1973_v11 = vpop.eup %1972 }
 0x3db   : > { %v982_v12 = vmul.f32 %v1973_v11, %v1965_v51 }
 0x3dd   : > { %v986_v14 = vpack.c.bf16 %v982_v12, %v982_v12 }
 0x3df   : > { %1817 = vmatmul.mubr.msk.bf16.vlgmr.msra.gmra.mrb[8].mxu1 %vm747_vm3, %v986_v14  ;;  %v1730_v14 = vld [vmem:[%s2663_s3] ss:$0 sm:$0xff] }
 0x3e0   : > { %1828 = vmatprep.mubr.msk.bf16.mxu1 %vm2116_vm1, %v2115_v2 }
 0x434   : > { %v971_v15 = vpop.xlane.xlu1 %970 }
 0x435   : > { %1974 = vrcp.f32 %v971_v15 }
 0x438   : > { %v974_v17 = vpop.xlane.xlu0 %973 }
 0x439   : > { %1976 = vrcp.f32 %v974_v17  ;;  %v1731_v17 = vld [vmem:[%s2664_s16] ss:$0 sm:$0xff] }
 0x43c   : > { %v977_v18 = vpop.xlane.xlu1 %976  ;;  %v1136_v13 = vpop.permute.xlu0 %1135 }
 0x43d   : > { %1978 = vrcp.f32 %v977_v18  ;;  %v1141_v25 = vsel %vm995_vm4, %v1136_v13, 0  ;;  %v1963_v13 = vld [vmem:[%s2370_s26 + $0x18] sm:$0xff]  }
 0x43f   : > { %v1975_v16 = vpop.eup %1974 }
 0x440   : > { %v983_v19 = vmul.f32 %v1975_v16, %v1967_v3  ;;  %v1088_v20 = vpop.permute.xlu1 %1087 }
 0x441   : > { %v1093_v21 = vsel %vm995_vm4, %v1088_v20, 0  ;;  %v1962_v20 = vld [vmem:[%s2370_s26 + $0x10] sm:$0xff]  }
 0x442   : > { %1827 = vmatpush3.bf16.msra.mxu1 %v1093_v21  ;;  %v987_v22 = vpack.c.bf16 %v983_v19, %v983_v19  ;;  %v1732_v21 = vld [vmem:[%s645_s1] ss:$0 sm:$0xff]  ;;  %s2665_s1 = sld [smem:[#allocation12_spill]] }
 0x443   : > { %v1977_v23 = vpop.eup %1976  ;;  %1838 = vmatprep.subr.bf16.mxu1 %v2115_v2 }
 0x444   : > { %v984_v24 = vmul.f32 %v1977_v23, %v1969_v6  ;;  %1823 = vmatmul.mubr.msk.bf16.vlgmr.msra.gmra.mrb[12].mxu0 %vm747_vm3, %v987_v22  ;;  %v1958_v6 = vld [vmem:[%s2360_s30] sm:$0xff]   ;;  %s1495_s30 = sshll.u32 %s2384_s0, 4  ;;  %s2545_s30 = int_to_ptr.vmem [resolvable:$true] %s1495_s30 }
 0x445   : > { %1833 = vmatpush3.bf16.msra.mxu0 %v1141_v25  ;;  %1834 = vmatprep.mubr.msk.bf16.mxu0 %vm2116_vm1, %v2115_v2  ;;  %s2014_s20 = scalar_lea.vmem %s2545_s30, 128 }
 0x446   : > { %v988_v26 = vpack.c.bf16 %v984_v24, %v984_v24  ;;  %1846 = vmatprep.subr.bf16.mxu0 %v2115_v2  ;;  %p2015_p11 = scmp.ne.s32.totalorder %s2545_s30, %s2014_s20 }
 0x447   : > { %v1979_v27 = vpop.eup %1978 }
 0x448   : > { %v985_v28 = vmul.f32 %v1979_v27, %v1971_v8  ;;  %1829 = vmatmul.mubr.msk.bf16.vlgmr.msra.gmra.mrb[12].mxu1 %vm747_vm3, %v988_v26  ;;  %v1961_v8 = vld [vmem:[%s2370_s26 + $0x8] sm:$0xff]   ;;  %s1745_s29 = sshll.u32 %s2665_s1, 7 }
 0x449   : > { %1842 = vmatprep.mubr.msk.bf16.mxu1 %vm2116_vm1, %v2115_v2  ;;  %1839 = vmatpush3.bf16.msra.mxu1 %v1956_v34  ;;  %s2543_s16 = scalar_lea.hbm %s2669_s25, %s1745_s29 }
 0x44a   : > { %v989_v29 = vpack.c.bf16 %v985_v28, %v985_v28  ;;  %1840 = vmatprep.subr.bf16.mxu1 %v2115_v2 }
 0x44c   : > { %1835 = vmatmul.mubr.msk.bf16.vlgmr.msra.gmra.mrb[16].mxu0 %vm747_vm3, %v989_v29 }
 0x44d   : > { %1850 = vmatprep.mubr.msk.bf16.mxu0 %vm2116_vm1, %v2115_v2  ;;  %1841 = vmatpush3.bf16.msra.mxu1 %v1957_v35 }
 0x44e   : > { %1854 = vmatprep.subr.bf16.mxu1 %v2115_v2  ;;  %1847 = vmatpush3.bf16.msra.mxu0 %v1958_v6 }
 0x44f   : > { %1848 = vmatprep.subr.bf16.mxu0 %v2115_v2 }
 0x452   : > { %1849 = vmatpush3.bf16.msra.mxu0 %v1959_v7 }
 0x4b2   : > { %v1033_v30 = vpop.f32.mrb[8].mxu1 }
 0x4b3   : > { %v1818_v31 = vpop.f32.mrb[9].mxu1 }
 0x4b4   : > { %v1036_v32 = vpop.f32.mrb[10].mxu1 }
 0x4b5   : > { %v1819_v33 = vpop.f32.mrb[11].mxu1 }
 0x517   : > { %v1081_v36 = vpop.f32.mrb[12].mxu0 }
 0x518   : > { %1184 = vrot.lane.b32.xlu1 %v1081_v36, %s2122_s15  ;;  %v1824_v37 = vpop.f32.mrb[13].mxu0 }
 0x519   : > { %v1084_v38 = vpop.f32.mrb[14].mxu0 }
 0x51a   : > { %v1825_v39 = vpop.f32.mrb[15].mxu0 }
 0x51b   : > { %v1129_v40 = vpop.f32.mrb[12].mxu1 }
 0x51c   : > { %1188 = vrot.lane.b32.xlu0 %v1129_v40, %s2123_s18  ;;  %v1830_v41 = vpop.f32.mrb[13].mxu1 }
 0x51d   : > { %v1132_v42 = vpop.f32.mrb[14].mxu1 }
 0x51e   : > { %v1831_v43 = vpop.f32.mrb[15].mxu1 }
 0x51f   : > { %v1177_v44 = vpop.f32.mrb[16].mxu0 }
 0x520   : > { %1192 = vrot.lane.b32.xlu1 %v1177_v44, %s2124_s24  ;;  %v1836_v45 = vpop.f32.mrb[17].mxu0 }
 0x521   : > { %v1180_v46 = vpop.f32.mrb[18].mxu0  ;;  %v1742_v45 = vld [vmem:[%s656_s22] ss:$0 sm:$0xff] }
 0x522   : > { %v1837_v47 = vpop.f32.mrb[19].mxu0 }
 0x523   : > { %v1743_v47 = vld [vmem:[%s659_s7] ss:$0 sm:$0xff]  ;;  %s2125_s7 = smov [#allocation5]  }
 0x524   : > { %s2018_s12 = sshll.u32 %s2125_s7, 4  ;;  %s2019_s12 = int_to_ptr.vmem [resolvable:$false] %s2018_s12 }
 0x525   : > { %s2020_s13 = scalar_lea.vmem %s2019_s12, 256  ;;  %p2021_p4 = scmp.lt.s32.totalorder %s2545_s30, %s2019_s12 }
 0x526   : > { %p2022_p6 = scmp.lt.s32.totalorder %s2020_s13, %s2014_s20 }
 0x528   : > { %p2023_p3 = por %p2022_p6, %p2021_p4 }
 0x58a   : > { %v1185_v48 = vpop.permute.xlu1 %1184 }
 0x58b   : > { %v1195_v50 = vsel %vm747_vm3, %v1033_v30, %v1185_v48 }
 0x58e   : > { %v1189_v49 = vpop.permute.xlu0 %1188 }
 0x58f   : > { %v1197_v51 = vsel %vm1196_vm5, %v1195_v50, %v1189_v49 }
 0x592   : > { %v1193_v52 = vpop.permute.xlu1 %1192 }
 0x593   : > { %v1199_v53 = vsel %vm1198_vm6, %v1197_v51, %v1193_v52 }
 0x594   : > { %v1200_v54 = vpack.c.bf16 %v1199_v53, %v1199_v53 }
 0x596   : > { %1843 = vmatmul.mubr.msk.bf16.vlgmr.msra.gmra.mrb[16].mxu1 %vm693_vm2, %v1200_v54 }
 0x597   : > { %1862 = vmatprep.mubr.msk.bf16.mxu1 %vm2116_vm1, %v2115_v2 }
 0x669   : > { %v1261_v56 = vpop.f32.mrb[16].mxu1 }
 0x66a   : > { %v1262_v57 = vadd.f32 %v1726_v55, %v1261_v56  ;;  %v1844_v58 = vpop.f32.mrb[17].mxu1 }
 0x66b   : > { %v1264_v59 = vpop.f32.mrb[18].mxu1 }
 0x66c   : > { %v1845_v60 = vpop.f32.mrb[19].mxu1  ;;  %v1267_v61 = vadd.f32 %v1262_v57, %v2393_v4  ;;  %v1960_v4 = vld [vmem:[%s2370_s26] sm:$0xff]   ;;  %s2666_s26 = sld [smem:[#allocation21_spill]] }
 0x66d   : > { %1855 = vmatpush3.bf16.msra.mxu1 %v1960_v4 }
 0x66e   : > { %v1270_v62 = vsel %vm693_vm2, %v1267_v61, 0.0  ;;  %1856 = vmatprep.subr.bf16.mxu1 %v2115_v2 }
 0x66f   : > { %1271 = vadd.xlane.f32.xlu0 %v1270_v62 }
 0x671   : > { %1857 = vmatpush3.bf16.msra.mxu1 %v1961_v8 }
 0x672   : > { %1858 = vmatprep.subr.bf16.mxu1 %v2115_v2  ;;  %s1482_s22 = scalar_lea.sflag [#allocation4], %s2666_s26 }
 0x675   : > { %1859 = vmatpush3.bf16.msra.mxu1 %v1962_v20 }
 0x676   : > { %1860 = vmatprep.subr.bf16.mxu1 %v2115_v2  ;;  %v1736_v2 = vld [vmem:[%s653_s28] ss:$0 sm:$0xff]  ;;  %s2667_s28 = sld [smem:[#allocation18_spill]] }
 0x679   : > { %1861 = vmatpush3.bf16.msra.mxu1 %v1963_v13 }
 0x67c   : > { %p2671_p0 = scmp.ne.s32.totalorder %s2667_s28, 0 }
 0x67e   : > { %p2016_p7 = pnand %p2015_p11, %p2671_p0 }
 0x680   : > { %p2017_p13 = pneg %p2016_p7 }
 0x682   : > { %p2024_p8 = pnand %p2023_p3, %p2017_p13 }
 0x6fc   : > { %v1272_v63 = vpop.xlane.xlu0 %1271 }
 0x6fd   : > { %v1274_v0 = vmul.f32 0.03125, %v1272_v63 }
 0x6ff   : > { %v1275_v1 = vsub.f32 %v1267_v61, %v1274_v0 }
 0x701   : > { %v1276_v3 = vmul.f32 %v1275_v1, %v1275_v1 }
 0x703   : > { %v1277_v5 = vsel %vm693_vm2, %v1276_v3, 0.0 }
 0x704   : > { %1278 = vadd.xlane.f32.xlu1 %v1277_v5 }
 0x791   : > { %v1279_v9 = vpop.xlane.xlu1 %1278 }
 0x792   : > { %v1280_v10 = vmul.f32 0.03125, %v1279_v9 }
 0x794   : > { %v1281_v11 = vadd.f32 1e-12, %v1280_v10 }
 0x796   : > { %1980 = vrsqrt.f32 %v1281_v11 }
 0x7a0   : > { %v1981_v12 = vpop.eup %1980 }
 0x7a1   : > { %v1283_v15 = vmul.f32 %v1981_v12, %v1275_v1 }
 0x7a3   : > { %v1290_v18 = vmul.f32 %v1730_v14, %v1283_v15 }
 0x7a5   : > { %v1297_v16 = vadd.f32 %v1731_v17, %v1290_v18 }
 0x7a7   : > { %v1298_v19 = vpack.c.bf16 %v1297_v16, %v1297_v16 }
 0x7a9   : > { %1851 = vmatmul.mubr.msk.bf16.vlgmr.msra.gmra.mrb[20].mxu0 %vm693_vm2, %v1298_v19 }
 0x87c   : > { %v1359_v22 = vpop.f32.mrb[20].mxu0 }
 0x87d   : > { %v1360_v23 = vadd.f32 %v1732_v21, %v1359_v22  ;;  %v1852_v24 = vpop.f32.mrb[21].mxu0 }
 0x87e   : > { %v1362_v25 = vpop.f32.mrb[22].mxu0 }
 0x87f   : > { %v1365_v26 = vmax.f32 %v1360_v23, 0.0  ;;  %v1853_v27 = vpop.f32.mrb[23].mxu0 }
 0x881   : > { %v1366_v28 = vpack.c.bf16 %v1365_v26, %v1365_v26 }
 0x883   : > { %1863 = vmatmul.mubr.msk.bf16.vlgmr.msra.gmra.mrb[20].mxu1 %vm1406_vm7, %v1366_v28 }
 0x956   : > { %v1444_v29 = vpop.f32.mrb[20].mxu1 }
 0x957   : > { %v1445_v30 = vadd.f32 %v1736_v2, %v1444_v29  ;;  %v1864_v31 = vpop.f32.mrb[21].mxu1 }
 0x958   : > { %v1447_v32 = vpop.f32.mrb[22].mxu1 }
 0x959   : > { %v1865_v33 = vpop.f32.mrb[23].mxu1  ;;  %v1450_v34 = vadd.f32 %v1445_v30, %v1297_v16 }
 0x95b   : > { %v1453_v35 = vsel %vm693_vm2, %v1450_v34, 0.0 }
 0x95c   : > { %1454 = vadd.xlane.f32.xlu0 %v1453_v35 }
 0x9e9   : > { %v1455_v36 = vpop.xlane.xlu0 %1454 }
 0x9ea   : > { %v1456_v37 = vmul.f32 0.03125, %v1455_v36 }
 0x9ec   : > { %v1457_v38 = vsub.f32 %v1450_v34, %v1456_v37 }
 0x9ee   : > { %v1458_v39 = vmul.f32 %v1457_v38, %v1457_v38 }
 0x9f0   : > { %v1459_v40 = vsel %vm693_vm2, %v1458_v39, 0.0 }
 0x9f1   : > { %1460 = vadd.xlane.f32.xlu0 %v1459_v40 }
 0xa7e   : > { %v1461_v41 = vpop.xlane.xlu0 %1460 }
 0xa7f   : > { %v1462_v42 = vmul.f32 0.03125, %v1461_v41 }
 0xa81   : > { %v1463_v43 = vadd.f32 1e-12, %v1462_v42 }
 0xa83   : > { %1982 = vrsqrt.f32 %v1463_v43 }
 0xa8d   : > { %v1983_v44 = vpop.eup %1982 }
 0xa8e   : > { %v1465_v46 = vmul.f32 %v1983_v44, %v1457_v38 }
 0xa90   : > { %v1472_v48 = vmul.f32 %v1742_v45, %v1465_v46 }
 0xa92   : > { %v1479_v49 = vadd.f32 %v1743_v47, %v1472_v48 }
 0xa94   : > { %1480 = vst.msk [vmem:[%s2384_s0] sm:$0xff] %vm693_vm2, %v1479_v49 }
 0xa95   : > { %2027 = shalt.err (!%p2024_p8)
}
 0xa96   : > { %s2028_s0 = scalar_lea.hbm %s2543_s16, 128  ;;  %s2032_s1 = scalar_lea.hbm %s2670_s19, 256 }
 0xa97   : > { %p2029_p12 = scmp.ne.s32.totalorder %s2543_s16, %s2028_s0  ;;  %p2033_p5 = scmp.lt.u32.totalorder %s2543_s16, %s2670_s19 }
 0xa98   : > { %p2034_p10 = scmp.lt.u32.totalorder %s2032_s1, %s2028_s0  ;;  %p2036_p11 = scmp.lt.u32.totalorder %s2028_s0, %s2543_s16 }
 0xa99   : > { %p2030_p1 = pnand %p2029_p12, %p2671_p0 }
 0xa9a   : > { %p2035_p9 = por %p2034_p10, %p2033_p5 }
 0xa9b   : > { %p2031_p2 = pneg %p2030_p1 }
 0xa9c   : > { %p2037_p7 = por %p2036_p11, %p2035_p9 }
 0xa9e   : > { %p2038_p13 = pnand %p2037_p7, %p2031_p2 }
 0xaa0   : > { %2041 = shalt.err (!%p2038_p13)
}
 0xaa1   : > { %1868 = dma.vmem_to_hbm [thread:$0]  (%p2671_p0), %s2545_s30, 128, %s2543_s16, %s1482_s22  }
 0xaa2 PF: > { %s2672_s18 = sld [smem:[#allocation15_spill]]  ;;  %s2673_s24 = sld [smem:[#allocation8_spill]] }
 0xaa3   : > { %s2674_s14 = sld [smem:[#allocation19_spill]] }
 0xaa8   : > { %p1879_p4 = scmp.ge.s32.totalorder %s2672_s18, 2  ;;  %s1507_s23 = sand.u32 1, %s2673_s24  }
 0xaa9   : > { %p2675_p6 = scmp.ne.s32.totalorder %s2674_s14, 0  ;;  %s1508_s29 = scalar_lea.sflag [#allocation4], %s1507_s23 }
 0xaab   : > { %p1875_p3 = pnand %p1879_p4, %p2675_p6 }
 0xaad   : > { %2079 = dma.done.wait (!%p1875_p3), %s1508_s29, 128  }
 0xaae   : > { %2081 = vsyncadd (!%p1875_p3), %s1508_s29, 4294967168  ;;  %s29_s15 = sadd.s32 1, %s2672_s18   ;;  %s2676_s25 = sld [smem:[#allocation9_spill]] }
 0xaaf   : > { %p26_p8 = scmp.ge.s32.totalorder %s29_s15, 6   ;;  %s2677_s26 = sld [smem:[#allocation10_spill]] }
 0xab0   : > { %s2678_s27 = sld [smem:[#allocation20_spill]]  ;;  %s2679_s28 = sld [smem:[#allocation13_spill]] }
 0xab1   : > { %s2680_s29 = sld [smem:[#allocation14_spill]]  ;;  %s2681_s30 = sld [smem:[#allocation16_spill]] }
 0xab2   : > { %s2682_s14 = sld [smem:[#allocation17_spill]]  ;;  %28 = sbr.rel (!%p26_p8) target bundleno = 14 (0xe), region = 157 }
 0xab9   :  { %1513 = vsyncpa [#allocation3], 1 }
 0xaba   :  { %1515 = vsyncpa [#allocation3 + $0x1], 1 }
 0xabb   :  { %1516 = vsyncpa [#allocation4], 1 }
 0xabc   :  { %1518 = vsyncpa [#allocation4 + $0x1], 1 }

</bundles_post_ra>
